<compile_context>
chip_gen: v7x
topology: tpu7x:2x2x1
jax: 0.10.0
libtpu: 0.0.40
codegen_flags: <defaults>
</compile_context>

<pallas_src>
import jax
import jax.numpy as jnp
from jax.experimental import pallas as pl
from jax.experimental.pallas import tpu as pltpu

# Pallas only pays off for MiB-scale inputs; below this (in input bytes) let
# XLA fuse the concat into the consumer for free.
_PALLAS_MIN_INPUT_BYTES = 512 * 1024            # ~0.5 MiB of treatment data
# Total double-buffered VMEM for (input tile + output tile).  16 MiB keeps us
# inside v5e's headroom once vmem_limit_bytes is raised, well under v7x's
# 64 MiB physical, and gives ~8 MiB of HBM traffic per grid step.
_VMEM_TILE_BUDGET_BYTES = 16 * 1024 * 1024
_VMEM_LIMIT_BYTES = 32 * 1024 * 1024            # explicit scoped-VMEM limit
# Keep >= this many grid steps so read/write DMA overlap and both v7x TCs work.
_MIN_GRID_STEPS = 4


def _binary_feature_kernel(t_ref, o_ref):
    # t_ref: [TB, C] VMEM tile, o_ref: [TB, 2*C] VMEM tile.
    c = t_ref.shape[1]
    t = t_ref[...]
    one = jnp.asarray(1, dtype=t.dtype)
    o_ref[:, :c] = t           # first half:  treatment
    o_ref[:, c:] = one - t     # second half: 1 - treatment


def _sublane_multiple(dtype_bytes: int) -> int:
    # Packed sub-32-bit dtypes need 16 (bf16) / 32 (int8, fp8) row multiples.
    return {4: 8, 2: 16, 1: 32}.get(dtype_bytes, 8)


def _choose_block_rows(b: int, c: int, dtype_bytes: int) -> int:
    """Batch tile: ~_VMEM_TILE_BUDGET_BYTES of double-buffered in+out per step,
    rounded to the dtype sublane multiple, with >= _MIN_GRID_STEPS grid steps."""
    sub = _sublane_multiple(dtype_bytes)
    if b <= 2 * sub:
        return b  # tiny batch: single full-extent block (no sublane constraint)
    # per row: C (input) + 2C (output), double-buffered.
    per_row = 2 * 3 * max(c, 1) * dtype_bytes
    tb = _VMEM_TILE_BUDGET_BYTES // per_row
    # Never collapse to a 1-step grid: keep >= _MIN_GRID_STEPS steps so input
    # fetch / output writeback overlap and both v7x TensorCores get work.
    tb = min(tb, max(1, b // _MIN_GRID_STEPS))
    tb = max(sub, (tb // sub) * sub)
    if tb >= b:
        return b
    return tb


def _binary_feature_pallas(treatment: jax.Array) -> jax.Array:
    b, c = treatment.shape
    dtype = treatment.dtype
    dtype_bytes = jnp.dtype(dtype).itemsize

    tb = _choose_block_rows(b, c, dtype_bytes)
    grid = (pl.cdiv(b, tb),)

    return pl.pallas_call(
        _binary_feature_kernel,
        out_shape=jax.ShapeDtypeStruct((b, 2 * c), dtype),
        grid=grid,
        in_specs=[pl.BlockSpec((tb, c), lambda i: (i, 0))],
        out_specs=pl.BlockSpec((tb, 2 * c), lambda i: (i, 0)),
        compiler_params=pltpu.CompilerParams(
            dimension_semantics=("parallel",),
            vmem_limit_bytes=_VMEM_LIMIT_BYTES,
        ),
        cost_estimate=pl.CostEstimate(
            flops=b * c,
            transcendentals=0,
            bytes_accessed=3 * b * c * dtype_bytes,
        ),
    )(treatment)


def binary_feature(treatment: jax.Array) -> jax.Array:
    """Equivalent of BinaryFeature.forward: cat([t, 1 - t], dim=1)."""
    assert treatment.ndim == 2, "expected [batch, C] treatment"
    if not jnp.issubdtype(treatment.dtype, jnp.floating):
        # Match `1.0 - treatment` float promotion for int/bool treatments.
        treatment = treatment.astype(jnp.float32)

    b, c = treatment.shape
    in_bytes = b * c * jnp.dtype(treatment.dtype).itemsize
    lane_aligned = (c % 128 == 0) and c > 0
    if not lane_aligned or in_bytes < _PALLAS_MIN_INPUT_BYTES:
        # Narrow-C / small inputs: masked-lane DMA or launch overhead dominates;
        # XLA's fused concat is strictly better here.
        return jnp.concatenate([treatment, 1.0 - treatment], axis=1)
    return _binary_feature_pallas(treatment)


if __name__ == "__main__":
    key = jax.random.PRNGKey(0)
    k1, k2, k3 = jax.random.split(key, 3)

    # 1) IHDP-style tiny binary treatment indicator: [8, 1] (fused XLA path).
    t_small = jax.random.bernoulli(k1, p=0.5, shape=(8, 1)).astype(jnp.float32)
    out_small = jax.block_until_ready(binary_feature(t_small))
    ref_small = jnp.concatenate([t_small, 1.0 - t_small], axis=1)
    assert out_small.shape == (8, 2), out_small.shape
    assert jnp.allclose(out_small, ref_small)

    # 2) Lane-aligned f32 case: exercises the gridded, lane-dense Pallas path
    #    (tb=128 -> 4-step parallel grid, unmasked stores for both halves).
    t_f32 = jax.random.uniform(k2, shape=(512, 128), dtype=jnp.float32)
    out_f32 = jax.block_until_ready(_binary_feature_pallas(t_f32))
    ref_f32 = jnp.concatenate([t_f32, 1.0 - t_f32], axis=1)
    assert out_f32.shape == (512, 256), out_f32.shape
    assert jnp.allclose(out_f32, ref_f32)

    # 3) bf16 case: exercises the 16-row sublane-multiple tile rounding.
    t_bf16 = jax.random.uniform(k3, shape=(256, 256)).astype(jnp.bfloat16)
    out_bf16 = jax.block_until_ready(_binary_feature_pallas(t_bf16))
    ref_bf16 = jnp.concatenate([t_bf16, 1.0 - t_bf16], axis=1)
    assert out_bf16.shape == (256, 512), out_bf16.shape
    assert jnp.allclose(out_bf16.astype(jnp.float32), ref_bf16.astype(jnp.float32))

    print("KERNEL_OK")
</pallas_src>

<mosaic_0001>
module attributes {stable_mosaic.version = 11 : i64} {
  func.func @_binary_feature_kernel(%arg0: i32, %arg1: memref<128x128xf32, #tpu.memory_space<vmem>>, %arg2: memref<128x256xf32, #tpu.memory_space<vmem>>) attributes {dimension_semantics = [#tpu.dimension_semantics<parallel>], iteration_bounds = array<i64: 4>, scalar_prefetch = 0 : i64, scratch_operands = 0 : i64, tpu.core_type = #tpu.core_type<tc>, window_params = [{transform_indices = @transform_0, window_bounds = array<i64: 128, 128>}, {transform_indices = @transform_1, window_bounds = array<i64: 128, 256>}]} {
    %c0 = arith.constant 0 : index
    %c0_0 = arith.constant 0 : index
    %0 = vector.load %arg1[%c0, %c0_0] : memref<128x128xf32, #tpu.memory_space<vmem>>, vector<128x128xf32>
    %c0_1 = arith.constant 0 : index
    %c0_2 = arith.constant 0 : index
    %1 = vector.load %arg2[%c0_1, %c0_2] : memref<128x256xf32, #tpu.memory_space<vmem>>, vector<128x128xf32>
    tpu.vector_store %arg2[%c0_1, %c0_2], %0 {strides = array<i32>} : memref<128x256xf32, #tpu.memory_space<vmem>>, vector<128x128xf32>,
    %cst = arith.constant 1.000000e+00 : f32
    %2 = vector.broadcast %cst : f32 to vector<128x128xf32>
    %3 = arith.subf %2, %0 : vector<128x128xf32>
    %c0_3 = arith.constant 0 : index
    %c128 = arith.constant 128 : index
    %4 = vector.load %arg2[%c0_3, %c128] : memref<128x256xf32, #tpu.memory_space<vmem>>, vector<128x128xf32>
    tpu.vector_store %arg2[%c0_3, %c128], %3 {strides = array<i32>} : memref<128x256xf32, #tpu.memory_space<vmem>>, vector<128x128xf32>,
    return
  }
  func.func @transform_0(%arg0: i32) -> (i32, i32) {
    %c0_i32 = arith.constant 0 : i32
    %c0_i32_0 = arith.constant 0 : i32
    return %arg0, %c0_i32 : i32, i32
  }
  func.func @transform_1(%arg0: i32) -> (i32, i32) {
    %c0_i32 = arith.constant 0 : i32
    %c0_i32_0 = arith.constant 0 : i32
    return %arg0, %c0_i32 : i32, i32
  }
}

</mosaic_0001>

<bundles_post_ra>
// kernel: tpu_custom_call.1
= control target key start
LH: loop header
LB: loop body
LE: loop exit
PB: predicated region body
PF: predicated region fallthrough
CT: control target
= control target key end

     0   :  { %6 = vsyncpa [#allocation3], 0  ;;  %s689_s0 = inlined_call_operand.hbm [shape: f32[512,128], index: 0, kind: input, shape index: {}]   ;;  %s690_s1 = inlined_call_operand.hbm [shape: f32[512,256], index: 1, kind: output, shape index: {}]  }
   0x1   :  { %8 = vsyncpa [#allocation3 + $0x1], 0 }
   0x2   :  { %9 = vsyncpa [#allocation4], 0 }
   0x3   :  { %11 = vsyncpa [#allocation4 + $0x1], 0  ;;  %s471_s6 = smov 0   ;;  %s473_s7 = smov 0  }
   0x4   :  { %s475_s8 = smov 0   ;;  %s477_s9 = smov 0  }
   0x5 LB: > { %s492_s10 = sadd.s32 4294967295, %s453_s9   ;;  %s289_s11 = sadd.s32 4294967294, %s453_s9   ;;  %s453_s9 = sphi %s477_s9, %s702_s9   ;;  %s449_s8 = sphi %s475_s8, %s701_s8   ;;  %s445_s7 = sphi %s473_s7, %s700_s7   ;;  %s441_s6 = sphi %s471_s6, %s699_s6  }
   0x6   : > { %s496_s12 = sadd.s32 1, %s453_s9   ;;  %s24_s13 = sadd.s32 1, %s449_s8 }
   0x7   : > { %s21_s14 = ssub.s32 %s453_s9, %s496_s12  ;;  %p31_p0 = scmp.ne.s32.totalorder %s449_s8, %s445_s7 }
   0x8   : > { %p22_p1 = scmp.eq.s32.totalorder %s21_s14, 0  ;;  %p32_p2 = scmp.eq.s32.totalorder %s453_s9, 0 }
   0x9   : > { %p37_p3 = scmp.ne.s32.totalorder %s445_s7, %s441_s6  ;;  %p38_p4 = scmp.eq.s32.totalorder %s492_s10, 0 }
   0xa   : > { %s508_s15 = scalar_select %p22_p1, %s449_s8, %s24_s13  }
   0xb   : > { %p510_p5 = por %p32_p2, %p31_p0  ;;  %p514_p6 = por %p38_p4, %p37_p3 }
   0xc   : > { %p61_p7 = scmp.eq.s32.totalorder %s492_s10, 3  ;;  %p67_p8 = scmp.eq.s32.totalorder %s289_s11, 3 }
   0xd   : > { %p319_p9 = scmp.lt.s32.totalorder %s453_s9, 4  ;;  %s87_s20 = sand.u32 1, %s449_s8  }
   0xe   : > { %p520_p10 = por %p61_p7, %p31_p0  ;;  %p524_p11 = por %p67_p8, %p37_p3 }
   0xf   : > { %s304_s21 = sshll.u32 %s453_s9, 11  ;;  %s292_s22 = sshll.u32 %s87_s20, 7 }
  0x10   : > { %s694_s18 = scalar_select %p520_p10, 1, 0 }
  0x11   : > { %s695_s19 = scalar_select %p524_p11, 1, 0 }
  0x12   : > { %s533_s25 = scalar_lea.hbm %s689_s0, %s304_s21  ;;  %s91_s26 = scalar_lea.vmem [#allocation2], %s292_s22 }
  0x13   : > { %s98_s27 = sshll.u32 %s91_s26, 4  ;;  %p537_p12 = pnand %p319_p9, %p510_p5  ;;  %s541_s27 = int_to_ptr.vmem [resolvable:$true] %s98_s27 }
  0x14   : > { %s543_s29 = scalar_lea.sflag [#allocation3], %s87_s20  ;;  %s357_s30 = scalar_lea.hbm %s533_s25, 2048 }
  0x15   : > { %p358_p13 = scmp.ne.s32.totalorder %s533_s25, %s357_s30  ;;  %p359_p0 = pneg %p537_p12 }
  0x16   : > { %s362_s4 = scalar_lea.hbm %s689_s0, 8192  ;;  %p363_p3 = scmp.lt.u32.totalorder %s533_s25, %s689_s0 }
  0x17   : > { %p360_p1 = pnand %p359_p0, %p358_p13  ;;  %p364_p4 = scmp.lt.u32.totalorder %s362_s4, %s357_s30 }
  0x18   : > { %p366_p7 = scmp.lt.u32.totalorder %s357_s30, %s533_s25 }
  0x19   : > { %p361_p2 = pneg %p360_p1  ;;  %p365_p5 = por %p364_p4, %p363_p3 }
  0x1b   : > { %p367_p8 = por %p366_p7, %p365_p5 }
  0x1d   : > { %p368_p9 = pnand %p367_p8, %p361_p2 }
  0x1f   : > { %371 = shalt.err (!%p368_p9)
}
  0x20   : > { %s372_s13 = scalar_lea.vmem %s541_s27, 2048  ;;  %s455_s14 = smov [#allocation2]  }
  0x21   : > { %p373_p13 = scmp.ne.s32.totalorder %s541_s27, %s372_s13  ;;  %s377_s16 = sshll.u32 %s455_s14, 4  ;;  %s378_s16 = int_to_ptr.vmem [resolvable:$false] %s377_s16 }
  0x22   : > { %s379_s20 = scalar_lea.vmem %s378_s16, 4096  ;;  %p380_p10 = scmp.lt.s32.totalorder %s541_s27, %s378_s16 }
  0x23   : > { %p375_p1 = pnand %p373_p13, %p359_p0  ;;  %p381_p3 = scmp.lt.s32.totalorder %s379_s20, %s372_s13 }
  0x25   : > { %p376_p11 = pneg %p375_p1  ;;  %p382_p4 = por %p381_p3, %p380_p10 }
  0x27   : > { %p383_p5 = pnand %p382_p4, %p376_p11 }
  0x29   : > { %386 = shalt.err (!%p383_p5)
}
  0x2a   : > { %s456_s21 = smov 128   ;;  %s457_s22 = smov 8  }
  0x2b   : > { %314 = dma.hbm_to_vmem [thread:$0]  (!%p537_p12), %s533_s25, 2048, %s541_s27, %s543_s29, %s456_s21, %s456_s21, %s457_s22  }
  0x2c   : > { %p295_p0 = scmp.ge.s32.totalorder %s453_s9, 1  ;;  %p106_p2 = scmp.lt.s32.totalorder %s453_s9, 5 }
  0x2e   : > { %p107_p7 = pnand %p295_p0, %p106_p2 }
  0x2f   : > { %s574_s23 = sand.u32 (!%p107_p7), 1, %s445_s7  }
  0x30   : > { %110 = sbr.rel (%p107_p7) target bundleno = 88 (0x58), region = 24  ;;  %s296_s24 = sshll.u32 (!%p107_p7), %s574_s23, 7 }
  0x31   : > { %s113_s26 = scalar_lea.sflag (!%p107_p7), [#allocation3], %s574_s23  ;;  %s578_s30 = scalar_lea.vmem (!%p107_p7), [#allocation2], %s296_s24 }
  0x37   : > { %432 = dma.done.wait (%p514_p6), %s113_s26, 2048  }
  0x38   : > { %434 = vsyncadd (%p514_p6), %s113_s26, 4294965248  ;;  %s297_s25 = sshll.u32 %s574_s23, 8  ;;  %v137_v0 = vld [vmem:[%s578_s30] sm:$0xff]  ;;  %v138_v1 = vld [vmem:[%s578_s30 + $0x8] sm:$0xff]  ;;  %s306_s27 = sshll.u32 %s492_s10, 12 }
  0x39   : > { %v139_v2 = vld [vmem:[%s578_s30 + $0x10] sm:$0xff]  ;;  %s589_s28 = scalar_lea.vmem [#allocation5], %s297_s25  ;;  %v169_v3 = vsub.f32 1.0, %v137_v0  ;;  %v170_v4 = vsub.f32 1.0, %v138_v1  ;;  %v140_v6 = vld [vmem:[%s578_s30 + $0x18] sm:$0xff]  ;;  %v141_v7 = vld [vmem:[%s578_s30 + $0x20] sm:$0xff]  ;;  %s634_s3 = scalar_lea.hbm %s690_s1, %s306_s27 }
  0x3a   : > { %s216_s17 = sshll.u32 %s589_s28, 4  ;;  %153 = vst [vmem:[%s589_s28] sm:$0xff] %v137_v0  ;;  %154 = vst [vmem:[%s589_s28 + $0x10] sm:$0xff] %v138_v1  ;;  %v171_v5 = vsub.f32 1.0, %v139_v2  ;;  %v142_v8 = vld [vmem:[%s578_s30 + $0x28] sm:$0xff]  ;;  %v172_v9 = vsub.f32 1.0, %v140_v6  ;;  %v173_v10 = vsub.f32 1.0, %v141_v7  ;;  %s638_s17 = int_to_ptr.vmem [resolvable:$true] %s216_s17 }
  0x3b   : > { %155 = vst [vmem:[%s589_s28 + $0x20] sm:$0xff] %v139_v2  ;;  %156 = vst [vmem:[%s589_s28 + $0x30] sm:$0xff] %v140_v6  ;;  %v174_v11 = vsub.f32 1.0, %v142_v8  ;;  %v143_v12 = vld [vmem:[%s578_s30 + $0x30] sm:$0xff]  ;;  %v144_v13 = vld [vmem:[%s578_s30 + $0x38] sm:$0xff]  ;;  %s202_s10 = scalar_lea.sflag [#allocation4], %s574_s23 }
  0x3c   : > { %157 = vst [vmem:[%s589_s28 + $0x40] sm:$0xff] %v141_v7  ;;  %158 = vst [vmem:[%s589_s28 + $0x50] sm:$0xff] %v142_v8  ;;  %v145_v14 = vld [vmem:[%s578_s30 + $0x40] sm:$0xff]  ;;  %v175_v15 = vsub.f32 1.0, %v143_v12  ;;  %v176_v16 = vsub.f32 1.0, %v144_v13  ;;  %v146_v18 = vld [vmem:[%s578_s30 + $0x48] sm:$0xff] }
  0x3d   : > { %185 = vst [vmem:[%s589_s28 + $0x8] sm:$0xff] %v169_v3  ;;  %186 = vst [vmem:[%s589_s28 + $0x18] sm:$0xff] %v170_v4  ;;  %v177_v17 = vsub.f32 1.0, %v145_v14  ;;  %v147_v19 = vld [vmem:[%s578_s30 + $0x50] sm:$0xff]  ;;  %v148_v20 = vld [vmem:[%s578_s30 + $0x58] sm:$0xff]  ;;  %v178_v21 = vsub.f32 1.0, %v146_v18 }
  0x3e   : > { %187 = vst [vmem:[%s589_s28 + $0x28] sm:$0xff] %v171_v5  ;;  %159 = vst [vmem:[%s589_s28 + $0x60] sm:$0xff] %v143_v12  ;;  %v179_v22 = vsub.f32 1.0, %v147_v19  ;;  %v180_v23 = vsub.f32 1.0, %v148_v20  ;;  %v149_v24 = vld [vmem:[%s578_s30 + $0x60] sm:$0xff]  ;;  %v150_v25 = vld [vmem:[%s578_s30 + $0x68] sm:$0xff] }
  0x3f   : > { %160 = vst [vmem:[%s589_s28 + $0x70] sm:$0xff] %v144_v13  ;;  %161 = vst [vmem:[%s589_s28 + $0x80] sm:$0xff] %v145_v14  ;;  %v151_v26 = vld [vmem:[%s578_s30 + $0x70] sm:$0xff]  ;;  %v181_v27 = vsub.f32 1.0, %v149_v24  ;;  %v182_v28 = vsub.f32 1.0, %v150_v25  ;;  %v152_v30 = vld [vmem:[%s578_s30 + $0x78] sm:$0xff] }
  0x40   : > { %188 = vst [vmem:[%s589_s28 + $0x38] sm:$0xff] %v172_v9  ;;  %189 = vst [vmem:[%s589_s28 + $0x48] sm:$0xff] %v173_v10  ;;  %v183_v29 = vsub.f32 1.0, %v151_v26  ;;  %v184_v31 = vsub.f32 1.0, %v152_v30  ;;  %s387_s4 = scalar_lea.vmem %s638_s17, 4096  ;;  %p697_p10 = scmp.ne.s32.totalorder %s694_s18, 0 }
  0x41   : > { %190 = vst [vmem:[%s589_s28 + $0x58] sm:$0xff] %v174_v11  ;;  %162 = vst [vmem:[%s589_s28 + $0x90] sm:$0xff] %v146_v18  ;;  %p388_p6 = scmp.ne.s32.totalorder %s638_s17, %s387_s4  ;;  %s458_s5 = smov [#allocation5]  }
  0x42   : > { %163 = vst [vmem:[%s589_s28 + $0xa0] sm:$0xff] %v147_v19  ;;  %164 = vst [vmem:[%s589_s28 + $0xb0] sm:$0xff] %v148_v20  ;;  %s391_s11 = sshll.u32 %s458_s5, 4  ;;  %s392_s11 = int_to_ptr.vmem [resolvable:$false] %s391_s11 }
  0x43   : > { %191 = vst [vmem:[%s589_s28 + $0x68] sm:$0xff] %v175_v15  ;;  %192 = vst [vmem:[%s589_s28 + $0x78] sm:$0xff] %v176_v16  ;;  %p389_p11 = pnand %p388_p6, %p697_p10  ;;  %s393_s13 = scalar_lea.vmem %s392_s11, 8192 }
  0x44   : > { %193 = vst [vmem:[%s589_s28 + $0x88] sm:$0xff] %v177_v17  ;;  %165 = vst [vmem:[%s589_s28 + $0xc0] sm:$0xff] %v149_v24  ;;  %p394_p8 = scmp.lt.s32.totalorder %s638_s17, %s392_s11  ;;  %p395_p9 = scmp.lt.s32.totalorder %s393_s13, %s387_s4 }
  0x45   : > { %166 = vst [vmem:[%s589_s28 + $0xd0] sm:$0xff] %v150_v25  ;;  %167 = vst [vmem:[%s589_s28 + $0xe0] sm:$0xff] %v151_v26  ;;  %p390_p12 = pneg %p389_p11 }
  0x46   : > { %194 = vst [vmem:[%s589_s28 + $0x98] sm:$0xff] %v178_v21  ;;  %195 = vst [vmem:[%s589_s28 + $0xa8] sm:$0xff] %v179_v22  ;;  %p396_p13 = por %p395_p9, %p394_p8 }
  0x47   : > { %196 = vst [vmem:[%s589_s28 + $0xb8] sm:$0xff] %v180_v23  ;;  %168 = vst [vmem:[%s589_s28 + $0xf0] sm:$0xff] %v152_v30 }
  0x48   : > { %197 = vst [vmem:[%s589_s28 + $0xc8] sm:$0xff] %v181_v27  ;;  %198 = vst [vmem:[%s589_s28 + $0xd8] sm:$0xff] %v182_v28  ;;  %p397_p1 = pnand %p396_p13, %p390_p12 }
  0x49   : > { %199 = vst [vmem:[%s589_s28 + $0xe8] sm:$0xff] %v183_v29  ;;  %200 = vst [vmem:[%s589_s28 + $0xf8] sm:$0xff] %v184_v31 }
  0x4a   : > { %400 = shalt.err (!%p397_p1)
}
  0x4b   : > { %s401_s14 = scalar_lea.hbm %s634_s3, 4096  ;;  %s405_s21 = scalar_lea.hbm %s690_s1, 16384 }
  0x4c   : > { %p402_p3 = scmp.ne.s32.totalorder %s634_s3, %s401_s14  ;;  %p406_p0 = scmp.lt.u32.totalorder %s634_s3, %s690_s1 }
  0x4d   : > { %p407_p2 = scmp.lt.u32.totalorder %s405_s21, %s401_s14  ;;  %p409_p6 = scmp.lt.u32.totalorder %s401_s14, %s634_s3 }
  0x4e   : > { %p403_p4 = pnand %p402_p3, %p697_p10 }
  0x4f   : > { %p408_p7 = por %p407_p2, %p406_p0 }
  0x50   : > { %p404_p5 = pneg %p403_p4 }
  0x51   : > { %p410_p11 = por %p409_p6, %p408_p7 }
  0x53   : > { %p411_p12 = pnand %p410_p11, %p404_p5 }
  0x55   : > { %414 = shalt.err (!%p411_p12)
}
  0x56   : > { %s459_s26 = smov 256   ;;  %s460_s30 = smov 16  }
  0x57   : > { %309 = dma.vmem_to_hbm [thread:$0]  (%p697_p10), %s638_s17, 4096, %s634_s3, %s202_s10, %s459_s26, %s459_s26, %s460_s30  }
  0x58 PF: > { %p320_p8 = scmp.ge.s32.totalorder %s453_s9, 2  ;;  %s231_s25 = sand.u32 1, %s441_s6  }
  0x59   : > { %p698_p9 = scmp.ne.s32.totalorder %s695_s19, 0  ;;  %s232_s27 = scalar_lea.sflag [#allocation4], %s231_s25 }
  0x5b   : > { %p316_p13 = pnand %p320_p8, %p698_p9 }
  0x5d   : > { %436 = dma.done.wait (!%p316_p13), %s232_s27, 4096  }
  0x5e   : > { %438 = vsyncadd (!%p316_p13), %s232_s27, 4294963200  ;;  %p14_p1 = scmp.ge.s32.totalorder %s496_s12, 6   ;;  %s699_s6 = smov %s445_s7 }
  0x5f   : > { %s700_s7 = smov %s449_s8  ;;  %s701_s8 = smov %s508_s15 }
  0x60   : > { %s702_s9 = smov %s496_s12  ;;  %16 = sbr.rel (!%p14_p1) target bundleno = 5 (0x5), region = 69 }
  0x67   :  { %237 = vsyncpa [#allocation3], 1 }
  0x68   :  { %239 = vsyncpa [#allocation3 + $0x1], 1 }
  0x69   :  { %240 = vsyncpa [#allocation4], 1 }
  0x6a   :  { %242 = vsyncpa [#allocation4 + $0x1], 1 }

</bundles_post_ra>
